<compile_context>
chip_gen: v7x
topology: tpu7x:2x2x1
jax: 0.10.0
libtpu: 0.0.40
codegen_flags: <defaults>
</compile_context>

<pallas_src>
import jax
import jax.numpy as jnp
from jax.experimental import pallas as pl
from jax.experimental.pallas import tpu as pltpu


def _fused_kernel(x_ref, w_ref, b_ref, o_ref):
    # x_ref: (TM, G*KKC)   grouped im2col patches
    # w_ref: (G*KKC, G*C)  block-diagonal weight
    # b_ref: (1, G*C)      tiled bias
    # o_ref: (TM, G*C)     lane-dense (128-wide) output tile
    acc = jnp.dot(x_ref[...], w_ref[...], preferred_element_type=jnp.float32)
    acc = acc + b_ref[...]
    o_ref[...] = jnp.maximum(acc, 0.0).astype(o_ref.dtype)


def _round_up(x, m):
    return (x + m - 1) // m * m


def conv_transpose2d_relu_swapped(x_in, weight, bias, *, group=4, tm_max=256):
    """relu(conv_transpose2d(x_in.permute(0,3,2,1), weight, bias)).

    x_in: (N, H, W, C); weight: (Cin, Cout, K, K); bias: (Cout,).
    Returns (N, Cout, W+K-1, H+K-1)  (PyTorch NCHW layout of the permuted input).
    """
    N, H, W, Cin = x_in.shape
    Cin_w, Cout, K, _ = weight.shape
    assert Cin == Cin_w
    P = K - 1
    OH, OW = H + P, W + P          # internal channels-last output spatial dims
    KKC = K * K * Cin
    G = group

    # ---- weight preprocessing (tiny, (3,32,3,3)) ---------------------------
    # Full correlation with flipped kernel; permute's H<->W swap folded in by
    # also swapping the kernel spatial axes:
    #   Wk[kh, kw, ci, co] = weight[ci, co, K-1-kw, K-1-kh]
    wf = jnp.flip(weight, axis=(2, 3))                    # (Cin, Cout, K, K)
    wk = jnp.transpose(wf, (3, 2, 0, 1))                  # (K, K, Cin, Cout)
    wmat = wk.reshape(KKC, Cout)                          # row = (kh*K+kw)*Cin+ci
    # Block-diagonal RHS: G output pixels per matmul row -> 128-lane output.
    w_bd = jnp.kron(jnp.eye(G, dtype=wmat.dtype), wmat)   # (G*KKC, G*Cout)
    b_bd = jnp.tile(bias, G).reshape(1, G * Cout)

    # ---- im2col in the wrapper (zero pad = "full" conv) --------------------
    xp = jnp.pad(x_in, ((0, 0), (P, P), (P, P), (0, 0)))  # (N, Hp, Wp, Cin)
    patches = jnp.concatenate(
        [xp[:, kh:kh + OH, kw:kw + OW, :] for kh in range(K) for kw in range(K)],
        axis=-1)                                          # (N, OH, OW, KKC)
    m_total = N * OH * OW
    flat = patches.reshape(m_total, KKC)

    # Pad rows so the grouped row count divides the row tile.
    m_g = pl.cdiv(m_total, G)
    tm = tm_max if m_g > tm_max else _round_up(m_g, 8)
    m_g_pad = _round_up(m_g, tm)
    m_pad = m_g_pad * G
    flat = jnp.pad(flat, ((0, m_pad - m_total), (0, 0)))
    lhs = flat.reshape(m_g_pad, G * KKC)                  # row-major regroup (free)

    out = pl.pallas_call(
        _fused_kernel,
        out_shape=jax.ShapeDtypeStruct((m_g_pad, G * Cout), x_in.dtype),
        grid_spec=pltpu.PrefetchScalarGridSpec(
            num_scalar_prefetch=0,
            grid=(m_g_pad // tm,),
            in_specs=[
                pl.BlockSpec((tm, G * KKC), lambda i: (i, 0)),
                pl.BlockSpec((G * KKC, G * Cout), lambda i: (0, 0)),
                pl.BlockSpec((1, G * Cout), lambda i: (0, 0)),
            ],
            out_specs=pl.BlockSpec((tm, G * Cout), lambda i: (i, 0)),
        ),
        compiler_params=pltpu.CompilerParams(
            dimension_semantics=("parallel",)),
    )(lhs, w_bd, b_bd)

    out = out.reshape(m_pad, Cout)[:m_total]              # row-major ungroup (free)
    out = out.reshape(N, OH, OW, Cout)
    # channels-last (N, OH, OW, Cout) -> PyTorch (N, Cout, W+2, H+2)
    return jnp.transpose(out, (0, 3, 2, 1))


def model_forward(x_in, weight, bias):
    # x_in: (N, H, W, C) exactly as the PyTorch script feeds the module.
    return conv_transpose2d_relu_swapped(x_in, weight, bias)


def _reference(x_in, weight, bias):
    # Plain-JAX reference of the same math (for sanity check).
    x = jnp.transpose(x_in, (0, 3, 2, 1))
    Cin, Cout, K, _ = weight.shape
    N, _, H, W = x.shape
    OH, OW = H + K - 1, W + K - 1
    xp = jnp.pad(x, ((0, 0), (0, 0), (K - 1, K - 1), (K - 1, K - 1)))
    wf = jnp.flip(weight, axis=(2, 3))
    out = jnp.zeros((N, Cout, OH, OW), x.dtype)
    for kh in range(K):
        for kw in range(K):
            out = out + jnp.einsum(
                "nchw,cd->ndhw", xp[:, :, kh:kh + OH, kw:kw + OW], wf[:, :, kh, kw])
    return jnp.maximum(out + bias[None, :, None, None], 0.0)


if __name__ == "__main__":
    key = jax.random.PRNGKey(0)
    k_x, k_w, k_b = jax.random.split(key, 3)

    # Small shapes consistent with the module (C=3); H != W to exercise the
    # permute(0,3,2,1) axis swap.
    N, H, W, C = 2, 16, 12, 3
    Cout, K = 32, 3

    x_in = jax.random.normal(k_x, (N, H, W, C), dtype=jnp.float32)
    # ConvTranspose2d weight: (in_channels, out_channels, kH, kW)
    fan = C * K * K
    bound = 1.0 / (fan ** 0.5)
    weight = jax.random.uniform(k_w, (C, Cout, K, K), jnp.float32, -bound, bound)
    bias = jax.random.uniform(k_b, (Cout,), jnp.float32, -bound, bound)

    y = jax.block_until_ready(model_forward(x_in, weight, bias))

    assert y.shape == (N, Cout, W + K - 1, H + K - 1), y.shape
    y_ref = _reference(x_in, weight, bias)
    err = float(jnp.max(jnp.abs(y - y_ref)))
    assert jnp.allclose(y, y_ref, atol=2e-5, rtol=2e-5), err

    print("KERNEL_OK")
</pallas_src>

<mosaic_0001>
module attributes {stable_mosaic.version = 11 : i64} {
  func.func @_fused_kernel(%arg0: i32, %arg1: memref<128x108xf32, #tpu.memory_space<vmem>>, %arg2: memref<108x128xf32, #tpu.memory_space<vmem>>, %arg3: memref<1x128xf32, #tpu.memory_space<vmem>>, %arg4: memref<128x128xf32, #tpu.memory_space<vmem>>) attributes {dimension_semantics = [#tpu.dimension_semantics<parallel>], iteration_bounds = array<i64: 1>, scalar_prefetch = 0 : i64, scratch_operands = 0 : i64, tpu.core_type = #tpu.core_type<tc>, window_params = [{transform_indices = @transform_0, window_bounds = array<i64: 128, 108>}, {pipeline_mode = #tpu.pipeline_mode<synchronous>, transform_indices = @transform_1, window_bounds = array<i64: 108, 128>}, {pipeline_mode = #tpu.pipeline_mode<synchronous>, transform_indices = @transform_2, window_bounds = array<i64: 1, 128>}, {transform_indices = @transform_3, window_bounds = array<i64: 128, 128>}]} {
    %c0 = arith.constant 0 : index
    %c0_0 = arith.constant 0 : index
    %0 = vector.load %arg1[%c0, %c0_0] : memref<128x108xf32, #tpu.memory_space<vmem>>, vector<128x108xf32>
    %c0_1 = arith.constant 0 : index
    %c0_2 = arith.constant 0 : index
    %1 = vector.load %arg2[%c0_1, %c0_2] : memref<108x128xf32, #tpu.memory_space<vmem>>, vector<108x128xf32>
    %cst = arith.constant dense<0.000000e+00> : vector<128x128xf32>
    %2 = tpu.matmul %0, %1, %cst {dimension_numbers = #tpu.dot_dimension_numbers<[1], [0], [0], [1], [0, 0, 1, 1], [], []>} : vector<128x108xf32>, vector<108x128xf32>, vector<128x128xf32> -> vector<128x128xf32>
    %c0_3 = arith.constant 0 : index
    %c0_4 = arith.constant 0 : index
    %3 = vector.load %arg3[%c0_3, %c0_4] : memref<1x128xf32, #tpu.memory_space<vmem>>, vector<1x128xf32>
    %4 = vector.broadcast %3 : vector<1x128xf32> to vector<128x128xf32>
    %5 = arith.addf %2, %4 : vector<128x128xf32>
    %cst_5 = arith.constant 0.000000e+00 : f32
    %6 = vector.broadcast %cst_5 : f32 to vector<128x128xf32>
    %7 = arith.maximumf %5, %6 : vector<128x128xf32>
    %c0_6 = arith.constant 0 : index
    %c0_7 = arith.constant 0 : index
    %8 = vector.load %arg4[%c0_6, %c0_7] : memref<128x128xf32, #tpu.memory_space<vmem>>, vector<128x128xf32>
    tpu.vector_store %arg4[%c0_6, %c0_7], %7 {strides = array<i32>} : memref<128x128xf32, #tpu.memory_space<vmem>>, vector<128x128xf32>,
    return
  }
  func.func @transform_0(%arg0: i32) -> (i32, i32) {
    %c0_i32 = arith.constant 0 : i32
    %c0_i32_0 = arith.constant 0 : i32
    return %arg0, %c0_i32 : i32, i32
  }
  func.func @transform_1(%arg0: i32) -> (i32, i32) {
    %c0_i32 = arith.constant 0 : i32
    %c0_i32_0 = arith.constant 0 : i32
    %c0_i32_1 = arith.constant 0 : i32
    return %c0_i32, %c0_i32_0 : i32, i32
  }
  func.func @transform_2(%arg0: i32) -> (i32, i32) {
    %c0_i32 = arith.constant 0 : i32
    %c0_i32_0 = arith.constant 0 : i32
    %c0_i32_1 = arith.constant 0 : i32
    return %c0_i32, %c0_i32_0 : i32, i32
  }
  func.func @transform_3(%arg0: i32) -> (i32, i32) {
    %c0_i32 = arith.constant 0 : i32
    %c0_i32_0 = arith.constant 0 : i32
    return %arg0, %c0_i32 : i32, i32
  }
}

</mosaic_0001>

<bundles_post_ra>
// kernel: tpu_custom_call.1
= control target key start
LH: loop header
LB: loop body
LE: loop exit
PB: predicated region body
PF: predicated region fallthrough
CT: control target
= control target key end

     0   :  { %vm52_vm0 = vcmask 883712   ;;  %s615_s0 = inlined_call_operand.vmem [shape: f32[128,108], index: 0, kind: input, shape index: {}]   ;;  %s616_s1 = inlined_call_operand.vmem [shape: f32[108,128], index: 1, kind: input, shape index: {}]   ;;  %s617_s2 = inlined_call_operand.vmem [shape: f32[1,128], index: 2, kind: input, shape index: {}]   ;;  %s618_s3 = inlined_call_operand.hbm [shape: f32[128,128], index: 3, kind: output, shape index: {}]  }
   0x1   :  { %v31_v0 = vld [vmem:[%s616_s1] sm:$0xff]  ;;  %v32_v1 = vld [vmem:[%s616_s1 + $0x8] sm:$0xff]  ;;  %v33_v2 = vld [vmem:[%s616_s1 + $0x10] sm:$0xff] }
   0x2   :  { %v398_v3 = vpack.c.bf16 %v32_v1, %v31_v0  ;;  %v34_v4 = vld [vmem:[%s616_s1 + $0x18] sm:$0xff]  ;;  %v35_v6 = vld [vmem:[%s616_s1 + $0x20] sm:$0xff]  ;;  %v36_v7 = vld [vmem:[%s616_s1 + $0x28] sm:$0xff] }
   0x3   :  { %v402_v5 = vpack.c.bf16 %v34_v4, %v33_v2  ;;  %v406_v8 = vpack.c.bf16 %v36_v7, %v35_v6  ;;  %v15_v9 = vld [vmem:[%s615_s0] sm:$0xff]  ;;  %v37_v11 = vld [vmem:[%s616_s1 + $0x30] sm:$0xff]  ;;  %v38_v12 = vld [vmem:[%s616_s1 + $0x38] sm:$0xff] }
   0x4   :  { %399 = vmatprep.subr.bf16.mxu0 %v398_v3  ;;  %428 = vmatprep.subr.bf16.mxu1 %v398_v3  ;;  %v23_v10 = vld [vmem:[%s615_s0 + $0x40] sm:$0xff]  ;;  %v410_v13 = vpack.c.bf16 %v38_v12, %v37_v11  ;;  %v40_v15 = vld [vmem:[%s616_s1 + $0x48] sm:$0xff] }
   0x5   :  { %401 = vmatpush3.bf16.msra.mxu0 %v398_v3  ;;  %435 = vmatpush3.bf16.msra.mxu1 %v398_v3  ;;  %v39_v14 = vld [vmem:[%s616_s1 + $0x40] sm:$0xff] }
   0x6   :  { %403 = vmatprep.subr.bf16.mxu0 %v402_v5  ;;  %429 = vmatprep.subr.bf16.mxu1 %v402_v5 }
   0x7   :  { %374 = vmatprep.mubr.msk.f32.mxu0 %vm52_vm0, %v15_v9  ;;  %386 = vmatprep.mubr.msk.f32.mxu1 %vm52_vm0, %v23_v10 }
   0x9   :  { %405 = vmatpush3.bf16.msra.mxu0 %v402_v5  ;;  %436 = vmatpush3.bf16.msra.mxu1 %v402_v5 }
   0xa   :  { %407 = vmatprep.subr.bf16.mxu0 %v406_v8  ;;  %430 = vmatprep.subr.bf16.mxu1 %v406_v8 }
   0xb   :  { %8 = vsyncpa [#allocation3], 0  ;;  %v414_v16 = vpack.c.bf16 %v40_v15, %v39_v14  ;;  %v41_v17 = vld [vmem:[%s616_s1 + $0x50] sm:$0xff]  ;;  %v42_v18 = vld [vmem:[%s616_s1 + $0x58] sm:$0xff]  ;;  %vm101_vm1 = vcmask 1043456   ;;  %vm470_vm2 = vmmov 1  }
   0xc   :  { %v418_v19 = vpack.c.bf16 %v42_v18, %v41_v17  ;;  %v43_v20 = vld [vmem:[%s616_s1 + $0x60] sm:$0xff]  ;;  %v44_v21 = vld [vmem:[%s616_s1 + $0x68] sm:$0xf]  ;;  %vm423_vm3 = vmpackc.low %vm101_vm1, %vm470_vm2 }
   0xd   :  { %409 = vmatpush3.bf16.msra.mxu0 %v406_v8  ;;  %437 = vmatpush3.bf16.msra.mxu1 %v406_v8  ;;  %v422_v22 = vpack.c.bf16 %v44_v21, %v43_v20  ;;  %v16_v23 = vld [vmem:[%s615_s0 + $0x8] sm:$0xff]  ;;  %v17_v25 = vld [vmem:[%s615_s0 + $0x10] sm:$0xff]  ;;  %v18_v27 = vld [vmem:[%s615_s0 + $0x18] sm:$0xff] }
   0xe   :  { %411 = vmatprep.subr.bf16.mxu0 %v410_v13  ;;  %431 = vmatprep.subr.bf16.mxu1 %v410_v13  ;;  %v24_v24 = vld [vmem:[%s615_s0 + $0x48] sm:$0xff]  ;;  %v25_v26 = vld [vmem:[%s615_s0 + $0x50] sm:$0xff]  ;;  %v26_v28 = vld [vmem:[%s615_s0 + $0x58] sm:$0xff] }
   0xf   :  { %v19_v29 = vld [vmem:[%s615_s0 + $0x20] sm:$0xff]  ;;  %v20_v31 = vld [vmem:[%s615_s0 + $0x28] sm:$0xff]  ;;  %v21_v33 = vld [vmem:[%s615_s0 + $0x30] sm:$0xff] }
  0x10   :  { %v27_v30 = vld [vmem:[%s615_s0 + $0x60] sm:$0xff]  ;;  %v28_v32 = vld [vmem:[%s615_s0 + $0x68] sm:$0xff]  ;;  %v29_v34 = vld [vmem:[%s615_s0 + $0x70] sm:$0xff] }
  0x11   :  { %413 = vmatpush3.bf16.msra.mxu0 %v410_v13  ;;  %438 = vmatpush3.bf16.msra.mxu1 %v410_v13  ;;  %v22_v35 = vld [vmem:[%s615_s0 + $0x38] sm:$0xff]  ;;  %v298_v37 = vld [vmem:[%s617_s2] ss:$0 sm:$0xff] }
  0x12   :  { %415 = vmatprep.subr.bf16.mxu0 %v414_v16  ;;  %432 = vmatprep.subr.bf16.mxu1 %v414_v16  ;;  %v30_v36 = vld [vmem:[%s615_s0 + $0x78] sm:$0xff]  ;;  %s471_s0 = smov [#allocation2]  }
  0x13   :  { %s287_s2 = sshll.u32 %s471_s0, 4  ;;  %s288_s2 = int_to_ptr.vmem [resolvable:$true] %s287_s2 }
  0x14   :  { %s446_s19 = scalar_lea.vmem %s288_s2, 2048  ;;  %p451_p1 = scmp.lt.s32.totalorder %s288_s2, %s288_s2 }
  0x15   :  { %417 = vmatpush3.bf16.msra.mxu0 %v414_v16  ;;  %439 = vmatpush3.bf16.msra.mxu1 %v414_v16  ;;  %p447_p0 = scmp.ne.s32.totalorder %s288_s2, %s446_s19  ;;  %p452_p2 = scmp.lt.s32.totalorder %s446_s19, %s446_s19 }
  0x16   :  { %419 = vmatprep.subr.bf16.mxu0 %v418_v19  ;;  %433 = vmatprep.subr.bf16.mxu1 %v418_v19 }
  0x17   :  { %p453_p3 = por %p452_p2, %p451_p1 }
  0x19   :  { %421 = vmatpush3.bf16.msra.mxu0 %v418_v19  ;;  %440 = vmatpush3.bf16.msra.mxu1 %v418_v19  ;;  %p454_p4 = pnand %p453_p3, %p447_p0 }
  0x1a   :  { %424 = vmatprep.subr.msk.bf16.mxu0 %vm423_vm3, %v422_v22  ;;  %434 = vmatprep.subr.msk.bf16.mxu1 %vm423_vm3, %v422_v22 }
  0x1d   :  { %427 = vmatpush3.bf16.msk.msra.mxu0 %vm423_vm3, %v422_v22  ;;  %441 = vmatpush3.bf16.msk.msra.mxu1 %vm423_vm3, %v422_v22 }
  0x20   :  { %375 = vmatmul.mubr.msk.f32.vlgmr.msra.gmra.mrb[0].mxu0 %vm52_vm0, %v16_v23  ;;  %387 = vmatmul.mubr.msk.f32.vlgmr.msra.gmra.mrb[0].mxu1 %vm52_vm0, %v24_v24 }
  0x21   :  { %377 = vmatprep.mubr.msk.f32.mxu0 %vm52_vm0, %v17_v25  ;;  %389 = vmatprep.mubr.msk.f32.mxu1 %vm52_vm0, %v25_v26 }
  0x24   :  { %378 = vmatmul.mubr.msk.f32.gmra.mrb[2].mxu0 %vm52_vm0, %v18_v27  ;;  %390 = vmatmul.mubr.msk.f32.gmra.mrb[2].mxu1 %vm52_vm0, %v26_v28 }
  0x25   :  { %380 = vmatprep.mubr.msk.f32.mxu0 %vm52_vm0, %v19_v29  ;;  %392 = vmatprep.mubr.msk.f32.mxu1 %vm52_vm0, %v27_v30 }
  0x28   :  { %381 = vmatmul.mubr.msk.f32.gmra.mrb[4].mxu0 %vm52_vm0, %v20_v31  ;;  %393 = vmatmul.mubr.msk.f32.gmra.mrb[4].mxu1 %vm52_vm0, %v28_v32 }
  0x29   :  { %383 = vmatprep.mubr.msk.f32.mxu0 %vm52_vm0, %v21_v33  ;;  %395 = vmatprep.mubr.msk.f32.mxu1 %vm52_vm0, %v29_v34 }
  0x2c   :  { %384 = vmatmul.mubr.msk.f32.gmra.mrb[6].mxu0 %vm52_vm0, %v22_v35  ;;  %396 = vmatmul.mubr.msk.f32.gmra.mrb[6].mxu1 %vm52_vm0, %v30_v36 }
  0xf3   :  { %v376_v38 = vpop.f32.mrb[0].mxu0  ;;  %v388_v39 = vpop.f32.mrb[0].mxu1 }
  0xf4   :  { %v177_v40 = vadd.f32 %v376_v38, %v298_v37  ;;  %v217_v41 = vadd.f32 %v388_v39, %v298_v37  ;;  %v171_v42 = vpop.f32.mrb[1].mxu0  ;;  %v211_v43 = vpop.f32.mrb[1].mxu1 }
  0xf5   :  { %v172_v44 = vadd.f32 %v298_v37, %v171_v42  ;;  %v212_v45 = vadd.f32 %v298_v37, %v211_v43 }
  0xf6   :  { %v251_v46 = vmax.f32 %v177_v40, 0.0  ;;  %v259_v47 = vmax.f32 %v217_v41, 0.0 }
  0xf7   :  { %v250_v48 = vmax.f32 %v172_v44, 0.0  ;;  %v258_v49 = vmax.f32 %v212_v45, 0.0  ;;  %v379_v50 = vpop.f32.mrb[2].mxu0  ;;  %v391_v51 = vpop.f32.mrb[2].mxu1 }
  0xf8   :  { %267 = vst [vmem:[#allocation2 + $0x8] sm:$0xff] %v251_v46  ;;  %275 = vst [vmem:[#allocation2 + $0x48] sm:$0xff] %v259_v47  ;;  %v187_v52 = vadd.f32 %v379_v50, %v298_v37  ;;  %v227_v53 = vadd.f32 %v391_v51, %v298_v37  ;;  %v181_v54 = vpop.f32.mrb[3].mxu0  ;;  %v221_v55 = vpop.f32.mrb[3].mxu1 }
  0xf9   :  { %266 = vst [vmem:[#allocation2] sm:$0xff] %v250_v48  ;;  %274 = vst [vmem:[#allocation2 + $0x40] sm:$0xff] %v258_v49  ;;  %v182_v56 = vadd.f32 %v298_v37, %v181_v54  ;;  %v222_v57 = vadd.f32 %v298_v37, %v221_v55 }
  0xfa   :  { %v253_v58 = vmax.f32 %v187_v52, 0.0  ;;  %v261_v59 = vmax.f32 %v227_v53, 0.0 }
  0xfb   :  { %v252_v60 = vmax.f32 %v182_v56, 0.0  ;;  %v260_v61 = vmax.f32 %v222_v57, 0.0  ;;  %v382_v62 = vpop.f32.mrb[4].mxu0  ;;  %v394_v63 = vpop.f32.mrb[4].mxu1 }
  0xfc   :  { %269 = vst [vmem:[#allocation2 + $0x18] sm:$0xff] %v253_v58  ;;  %277 = vst [vmem:[#allocation2 + $0x58] sm:$0xff] %v261_v59  ;;  %v197_v0 = vadd.f32 %v382_v62, %v298_v37  ;;  %v237_v1 = vadd.f32 %v394_v63, %v298_v37  ;;  %v191_v2 = vpop.f32.mrb[5].mxu0  ;;  %v231_v3 = vpop.f32.mrb[5].mxu1 }
  0xfd   :  { %268 = vst [vmem:[#allocation2 + $0x10] sm:$0xff] %v252_v60  ;;  %276 = vst [vmem:[#allocation2 + $0x50] sm:$0xff] %v260_v61  ;;  %v192_v4 = vadd.f32 %v298_v37, %v191_v2  ;;  %v232_v5 = vadd.f32 %v298_v37, %v231_v3 }
  0xfe   :  { %v255_v6 = vmax.f32 %v197_v0, 0.0  ;;  %v263_v7 = vmax.f32 %v237_v1, 0.0 }
  0xff   :  { %v254_v8 = vmax.f32 %v192_v4, 0.0  ;;  %v262_v9 = vmax.f32 %v232_v5, 0.0  ;;  %v385_v10 = vpop.f32.mrb[6].mxu0  ;;  %v397_v11 = vpop.f32.mrb[6].mxu1 }
 0x100   :  { %271 = vst [vmem:[#allocation2 + $0x28] sm:$0xff] %v255_v6  ;;  %279 = vst [vmem:[#allocation2 + $0x68] sm:$0xff] %v263_v7  ;;  %v207_v12 = vadd.f32 %v385_v10, %v298_v37  ;;  %v247_v13 = vadd.f32 %v397_v11, %v298_v37  ;;  %v201_v14 = vpop.f32.mrb[7].mxu0  ;;  %v241_v15 = vpop.f32.mrb[7].mxu1 }
 0x101   :  { %270 = vst [vmem:[#allocation2 + $0x20] sm:$0xff] %v254_v8  ;;  %278 = vst [vmem:[#allocation2 + $0x60] sm:$0xff] %v262_v9  ;;  %v202_v16 = vadd.f32 %v298_v37, %v201_v14  ;;  %v242_v17 = vadd.f32 %v298_v37, %v241_v15 }
 0x102   :  { %v257_v18 = vmax.f32 %v207_v12, 0.0  ;;  %v265_v19 = vmax.f32 %v247_v13, 0.0 }
 0x103   :  { %v256_v20 = vmax.f32 %v202_v16, 0.0  ;;  %v264_v21 = vmax.f32 %v242_v17, 0.0 }
 0x104   :  { %273 = vst [vmem:[#allocation2 + $0x38] sm:$0xff] %v257_v18  ;;  %281 = vst [vmem:[#allocation2 + $0x78] sm:$0xff] %v265_v19 }
 0x105   :  { %272 = vst [vmem:[#allocation2 + $0x30] sm:$0xff] %v256_v20  ;;  %280 = vst [vmem:[#allocation2 + $0x70] sm:$0xff] %v264_v21 }
 0x106   :  { %457 = shalt.err (!%p454_p4)
}
 0x107   :  { %s458_s21 = scalar_lea.hbm %s618_s3, 2048 }
 0x108   :  { %p459_p5 = scmp.ne.s32.totalorder %s618_s3, %s458_s21  ;;  %p462_p6 = scmp.lt.u32.totalorder %s458_s21, %s618_s3 }
 0x10a   :  { %p464_p7 = pnand %p462_p6, %p459_p5 }
 0x10c   :  { %467 = shalt.err (!%p464_p7)
}
 0x10d   :  { %s472_s26 = smov 128   ;;  %s473_s27 = smov 8  }
 0x10e   :  { %293 = dma.vmem_to_hbm [thread:$0]  %s288_s2, 2048, %s618_s3, [#allocation3], %s472_s26, %s472_s26, %s473_s27  }
 0x10f   :  { %468 = dma.done.wait [#allocation3], 2048  }
 0x110   :  { %469 = vsyncadd [#allocation3], 4294965248 }
 0x111   :  { %297 = vsyncpa [#allocation3], 1 }

</bundles_post_ra>
